<compile_context>
chip_gen: v5e
topology: v5e:2x2
jax: 0.10.0
libtpu: 0.0.40
codegen_flags: <defaults>
</compile_context>

<pallas_src>
import math

import jax
import jax.numpy as jnp
from jax import lax
from jax.experimental import pallas as pl
from jax.experimental.pallas import tpu as pltpu


# ---------------------------------------------------------------------------
# One-time L2-normalization prepass (memory-bound, row-tiled).
# ---------------------------------------------------------------------------
def _normalize_kernel(x_ref, o_ref):
    x = x_ref[...].astype(jnp.float32)
    sq = jnp.sum(x * x, axis=1, keepdims=True)
    # F.normalize(x, dim=1): x / max(||x||, 1e-12) == x * rsqrt(max(||x||^2, 1e-24))
    o_ref[...] = (x * lax.rsqrt(jnp.maximum(sq, 1e-24))).astype(o_ref.dtype)


def _norm_block_rows(n):
    for tb in (256, 128, 64, 32, 16, 8):
        if n % tb == 0:
            return tb
    return n


def _l2_normalize_rows(z, out_dtype):
    n, d = z.shape
    tb = _norm_block_rows(n)
    return pl.pallas_call(
        _normalize_kernel,
        grid=(n // tb,),
        in_specs=[pl.BlockSpec((tb, d), lambda i: (i, 0))],
        out_specs=pl.BlockSpec((tb, d), lambda i: (i, 0)),
        out_shape=jax.ShapeDtypeStruct((n, d), out_dtype),
        compiler_params=pltpu.CompilerParams(dimension_semantics=("parallel",)),
    )(z)


# ---------------------------------------------------------------------------
# Main NT-Xent loss kernel.
# ---------------------------------------------------------------------------
def _make_ntxent_kernel(inv_temp, exp_self, matmul_dtype, exp_dtype):
    # inv_temp / exp_self are Python floats -> baked in as literals (no captured consts).
    use_f32_mxu = jnp.dtype(matmul_dtype) == jnp.dtype(jnp.float32)
    # f32 operands keep HIGHEST for exact module semantics; bf16 uses the fast MXU path.
    precision = lax.Precision.HIGHEST if use_f32_mxu else None
    exp_in_f32 = jnp.dtype(exp_dtype) == jnp.dtype(jnp.float32)

    def kernel(zq_ref, zp_ref, zk_ref, out_ref):
        q = zq_ref[...]          # (TQ, D) pre-normalized, matmul dtype
        p = zp_ref[...]          # (TQ, D) pre-normalized & pre-rolled positives
        k = zk_ref[...]          # (N,  D) pre-normalized key set (VMEM-resident)

        # Positive similarity: elementwise row dot in f32 (no (TQ,N) masks / gathers).
        q32 = q.astype(jnp.float32)
        p32 = p.astype(jnp.float32)
        pos_sim = jnp.sum(q32 * p32, axis=1, keepdims=True) * inv_temp      # (TQ, 1)

        # (TQ, N) similarity tile on the MXU; contract dim 1 of both operands directly
        # (no zk.T materialization / XLU transpose feeding the MXU).
        sim = lax.dot_general(
            q, k,
            dimension_numbers=(((1,), (1,)), ((), ())),
            preferred_element_type=jnp.float32,
            precision=precision,
        ) * inv_temp                                                        # (TQ, N) f32

        if exp_in_f32:
            exp_sim = jnp.exp(sim)
        else:
            # bf16 exponentials ~double EUP throughput on v6e/v7x; row sum stays f32.
            exp_sim = jnp.exp(sim.astype(exp_dtype)).astype(jnp.float32)

        # Diagonal exclusion: sim_ii == 1/T for L2-normalized rows, so subtract the
        # compile-time constant exp(1/T) instead of recomputing self-similarity.
        denom = jnp.sum(exp_sim, axis=1, keepdims=True) - exp_self          # (TQ, 1)

        # -log(exp(pos) / (denom + 1e-8)) == log(denom + 1e-8) - pos
        out_ref[...] = (jnp.log(denom + 1e-8) - pos_sim).astype(out_ref.dtype)

    return kernel


def _vmem_capacity_bytes():
    try:
        cap = int(pltpu.get_tpu_info().vmem_capacity_bytes)
        if cap > 0:
            return cap
    except Exception:
        pass
    return 64 * 1024 * 1024   # conservative fallback (v7x per-TensorCore VMEM)


def _choose_block_rows(n, d, key_itemsize, vmem_budget):
    """Largest TQ dividing N that (a) prefers multiples of 128 (<=256), (b) keeps
    num_blocks >= 2 for N >= 16 (both v7x TensorCores busy), (c) fits the VMEM budget."""
    if n < 16:
        return n
    # Per-query-row bytes: double-buffered q & p tiles + their f32 copies for the
    # positive row-dot + f32 sim & exp temporaries + loss rows.
    per_row = 4 * d * key_itemsize + 8 * d + 8 * n + 16
    fixed = n * d * key_itemsize          # single-buffered, VMEM-resident key set
    avail = max(vmem_budget - fixed, 8 * per_row)
    row_cap = max(int(avail // per_row), 8)
    cap = min(row_cap, n // 2, 256)
    best8 = None
    for tq in range(cap, 7, -1):
        if n % tq:
            continue
        if tq % 128 == 0:
            return tq                      # lane-aligned MXU M granularity
        if best8 is None and tq % 8 == 0:
            best8 = tq
    if best8 is not None:
        return best8
    # TODO(synk): allow non-8-aligned TQ = N/2 here once Mosaic handles those blocks.
    return n


def nt_xent_loss(z_all, temperature, *, matmul_dtype=jnp.bfloat16, exp_dtype=None,
                 block_rows=None):
    """NT-Xent loss. z_all: (batch_size_effective, dim). Returns scalar f32.

    matmul_dtype=jnp.float32 gives exact (HIGHEST-precision) module semantics;
    the bf16 default targets the bf16-native MXUs (v6e/v7x). On v5e pass
    exp_dtype=jnp.float32 (no bf16 EUP there)."""
    assert z_all.ndim == 2, "z_all must be (batch, dim)"
    n, d = z_all.shape
    assert n >= 2 and n % 2 == 0, "batch_size_effective must be even"
    # With L2-normalized rows |sim| <= 1/temperature; unstabilized exp is safe in f32
    # as long as 1/temperature stays well below ~88 (same assumption as the module).
    assert 1.0 / float(temperature) < 80.0, "temperature too small for unstabilized exp"
    half = n // 2

    inv_temp = 1.0 / float(temperature)
    exp_self = float(math.exp(inv_temp))          # exp(sim_ii) for unit-norm rows
    if exp_dtype is None:
        exp_dtype = matmul_dtype

    key_itemsize = jnp.dtype(matmul_dtype).itemsize
    vmem_budget = _vmem_capacity_bytes() // 2      # leave headroom for Mosaic scratch
    tq = (_choose_block_rows(n, d, key_itemsize, vmem_budget)
          if block_rows is None else int(block_rows))
    assert n % tq == 0 and (tq % 8 == 0 or tq == n), "bad block_rows"
    num_blocks = n // tq

    # One-time memory-bound prepass: normalize (and pre-cast) once, not per grid step.
    zn = _l2_normalize_rows(z_all, matmul_dtype)
    # Positive of row i is row (i + N/2) mod N: pre-roll so block i of zp is the
    # positive tile of block i (no in-kernel roll, no modular index map).
    zp = jnp.roll(zn, -half, axis=0)

    kernel = _make_ntxent_kernel(inv_temp, exp_self, matmul_dtype, exp_dtype)

    cost = pl.CostEstimate(
        flops=2 * n * n * d + 2 * n * d,
        transcendentals=n * n + n,
        bytes_accessed=3 * n * d * key_itemsize + n * 4,
    )

    per_row = pl.pallas_call(
        kernel,
        grid=(num_blocks,),
        in_specs=[
            # Query rows of this block.
            pl.BlockSpec((tq, d), lambda i: (i, 0)),
            # Positive rows (pre-rolled), same block index.
            pl.BlockSpec((tq, d), lambda i: (i, 0)),
            # Full key set, VMEM-resident across the grid; constant index map, so a
            # single buffer suffices (halves the largest VMEM consumer).
            pl.BlockSpec((n, d), lambda i: (0, 0), pipeline_mode=pl.Buffered(1)),
        ],
        out_specs=pl.BlockSpec((tq, 1), lambda i: (i, 0)),
        out_shape=jax.ShapeDtypeStruct((n, 1), jnp.float32),
        compiler_params=pltpu.CompilerParams(
            dimension_semantics=("parallel",),
            vmem_limit_bytes=int(vmem_budget),
        ),
        cost_estimate=cost,
    )(zn, zp, zn)

    # Tiny final reduction (N values) outside the kernel.
    return jnp.mean(per_row)


# ---------------------------------------------------------------------------
# Pure-JAX reference matching the PyTorch module semantics.
# ---------------------------------------------------------------------------
def _nt_xent_reference(z_all, temperature):
    n = z_all.shape[0]
    half = n // 2
    zn = z_all / jnp.maximum(jnp.linalg.norm(z_all, axis=1, keepdims=True), 1e-12)
    sim = jnp.dot(zn, zn.T, precision=lax.Precision.HIGHEST) / temperature
    pos_idx = jnp.concatenate([jnp.arange(half, n), jnp.arange(0, half)])
    numerator = jnp.exp(sim[jnp.arange(n), pos_idx])
    mask = ~jnp.eye(n, dtype=bool)
    denominator = jnp.sum(jnp.exp(sim) * mask, axis=1)
    return jnp.mean(-jnp.log(numerator / (denominator + 1e-8)))


if __name__ == "__main__":
    temperature = 0.5  # module config
    key0, key1 = jax.random.split(jax.random.PRNGKey(0))

    # 1) Module config: batch_size_effective = 8, dim = 128 (single block, exact f32).
    z_small = jax.random.normal(key0, (8, 128), dtype=jnp.float32)
    loss = jax.block_until_ready(
        nt_xent_loss(z_small, temperature, matmul_dtype=jnp.float32))
    ref = _nt_xent_reference(z_small, temperature)
    assert jnp.allclose(loss, ref, rtol=1e-5, atol=1e-5), (loss, ref)

    # 2) Larger batch: row-tiled (2 x 128-row blocks, megacore-parallel), default
    #    bf16-MXU + bf16-exp fast path (looser tolerance).
    z_big = jax.random.normal(key1, (256, 128), dtype=jnp.float32)
    ref_big = _nt_xent_reference(z_big, temperature)
    loss_bf16 = jax.block_until_ready(nt_xent_loss(z_big, temperature))
    assert jnp.allclose(loss_bf16, ref_big, rtol=5e-2, atol=5e-2), (loss_bf16, ref_big)

    # 3) Same batch on the exact f32 path (multi-block), tight tolerance.
    loss_f32 = jax.block_until_ready(
        nt_xent_loss(z_big, temperature, matmul_dtype=jnp.float32))
    assert jnp.allclose(loss_f32, ref_big, rtol=1e-5, atol=1e-5), (loss_f32, ref_big)

    print("KERNEL_OK")
</pallas_src>

<mosaic_0001>
module attributes {stable_mosaic.version = 11 : i64} {
  func.func @_normalize_kernel(%arg0: i32, %arg1: memref<8x128xf32, #tpu.memory_space<vmem>>, %arg2: memref<8x128xf32, #tpu.memory_space<vmem>>) attributes {dimension_semantics = [#tpu.dimension_semantics<parallel>], iteration_bounds = array<i64: 1>, scalar_prefetch = 0 : i64, scratch_operands = 0 : i64, tpu.core_type = #tpu.core_type<tc>, window_params = [{transform_indices = @transform_0, window_bounds = array<i64: 8, 128>}, {transform_indices = @transform_1, window_bounds = array<i64: 8, 128>}]} {
    %c0 = arith.constant 0 : index
    %c0_0 = arith.constant 0 : index
    %0 = vector.load %arg1[%c0, %c0_0] : memref<8x128xf32, #tpu.memory_space<vmem>>, vector<8x128xf32>
    %1 = arith.mulf %0, %0 : vector<8x128xf32>
    %cst = arith.constant dense<0.000000e+00> : vector<8xf32>
    %2 = vector.multi_reduction <add>, %1, %cst [1] : vector<8x128xf32> to vector<8xf32>
    %3 = vector.shape_cast %2 : vector<8xf32> to vector<8x1xf32>
    %cst_1 = arith.constant 1.000000e-24 : f32
    %4 = vector.broadcast %cst_1 : f32 to vector<8x1xf32>
    %5 = arith.maximumf %3, %4 : vector<8x1xf32>
    %6 = math.rsqrt %5 : vector<8x1xf32>
    %7 = vector.broadcast %6 : vector<8x1xf32> to vector<8x128xf32>
    %8 = arith.mulf %0, %7 : vector<8x128xf32>
    %c0_2 = arith.constant 0 : index
    %c0_3 = arith.constant 0 : index
    %9 = vector.load %arg2[%c0_2, %c0_3] : memref<8x128xf32, #tpu.memory_space<vmem>>, vector<8x128xf32>
    tpu.vector_store %arg2[%c0_2, %c0_3], %8 {strides = array<i32>} : memref<8x128xf32, #tpu.memory_space<vmem>>, vector<8x128xf32>,
    return
  }
  func.func @transform_0(%arg0: i32) -> (i32, i32) {
    %c0_i32 = arith.constant 0 : i32
    %c0_i32_0 = arith.constant 0 : i32
    return %arg0, %c0_i32 : i32, i32
  }
  func.func @transform_1(%arg0: i32) -> (i32, i32) {
    %c0_i32 = arith.constant 0 : i32
    %c0_i32_0 = arith.constant 0 : i32
    return %arg0, %c0_i32 : i32, i32
  }
}

</mosaic_0001>

<bundles_post_ra>
// kernel: tpu_custom_call.1
= control target key start
LH: loop header
LB: loop body
LE: loop exit
PB: predicated region body
PF: predicated region fallthrough
CT: control target
= control target key end

     0   :  { %6 = vsyncpa [#allocation3], 0  ;;  %s131_s0 = inlined_call_operand.hbm [shape: f32[8,128], index: 0, kind: input, shape index: {}]   ;;  %s132_s1 = inlined_call_operand.hbm [shape: f32[8,128], index: 1, kind: output, shape index: {}]  }
   0x1   :  { %7 = vsyncpa [#allocation4], 0  ;;  %s13_s8 = sshll.u32 %s131_s0, 4  ;;  %s113_s9 = smov [#allocation2]   ;;  %s14_s8 = int_to_ptr.hbm [resolvable:$true] %s13_s8 }
   0x2   :  { %s15_s10 = sshll.u32 %s113_s9, 4  ;;  %s16_s10 = int_to_ptr.vmem [resolvable:$true] %s15_s10 }
   0x3   :  { %18 = dma.hbm_to_vmem [thread:$0]  %s14_s8, 128, %s16_s10, [#allocation3]  }
   0x4   :  { %109 = dma.done.wait [#allocation3], 128  }
   0x5   :  { %110 = vsyncadd [#allocation3], 4294967168  ;;  %v23_v0 = vld [vmem:[#allocation2] sm:$0xff]  ;;  %s114_s0 = smov [#allocation5]   ;;  %s47_s14 = sshll.u32 %s132_s1, 4  ;;  %s48_s14 = int_to_ptr.hbm [resolvable:$true] %s47_s14 }
   0x6   :  { %v24_v1 = vmul.f32 %v23_v0, %v23_v0  ;;  %s45_s11 = sshll.u32 %s114_s0, 4  ;;  %s46_s11 = int_to_ptr.vmem [resolvable:$true] %s45_s11 }
   0x8   :  { %25 = vadd.xlane.f32.xlu0 %v24_v1 }
  0x7b   :  { %v26_v2 = vpop.xlane.xlu0 %25 }
  0x7c   :  { %v27_v3 = vmax.f32 %v26_v2, 1e-24 }
  0x7e   :  { %59 = vrsqrt.f32 %v27_v3  ;;  %vm34_vm1 = vweird.f32 %v27_v3 }
  0x84   :  { %v60_v4 = vpop.eup %59 }
  0x85   :  { %v29_v5 = vmul.f32 %v60_v4, %v27_v3  ;;  %vm35_vm0 = vweird.f32 %v60_v4 }
  0x86   :  { %vm36_vm2 = vmor %vm34_vm1, %vm35_vm0 }
  0x87   :  { %v30_v6 = vmul.f32 %v60_v4, %v29_v5 }
  0x89   :  { %v31_v7 = vmul.f32 0.5, %v30_v6 }
  0x8b   :  { %v32_v8 = vsub.f32 1.5, %v31_v7 }
  0x8d   :  { %v33_v9 = vmul.f32 %v60_v4, %v32_v8 }
  0x8f   :  { %v37_v10 = vsel %vm36_vm2, %v60_v4, %v33_v9 }
  0x90   :  { %v38_v11 = vmul.f32 %v37_v10, %v23_v0 }
  0x92   :  { %39 = vst [vmem:[#allocation5] sm:$0xff] %v38_v11 }
  0x93   :  { %50 = dma.vmem_to_hbm [thread:$0]  %s46_s11, 128, %s48_s14, [#allocation4]  }
  0x94   :  { %111 = dma.done.wait [#allocation4], 128  }
  0x95   :  { %112 = vsyncadd [#allocation4], 4294967168 }
  0x96   :  { %55 = vsyncpa [#allocation3], 1 }
  0x97   :  { %56 = vsyncpa [#allocation4], 1 }

</bundles_post_ra>
